<compile_context>
chip_gen: v5e
topology: v5e:2x2
jax: 0.10.0
libtpu: 0.0.40
codegen_flags: <defaults>
</compile_context>

<pallas_src>
import functools
import math

import jax
import jax.numpy as jnp
from jax.experimental import pallas as pl
from jax.experimental.pallas import tpu as pltpu


# ----------------------------------------------------------------------------
# Kernels
# ----------------------------------------------------------------------------

def _mlp_kernel_acc_in_out(x_ref, wgu_ref, wd_ref, o_ref, *, ti):
    """Grid step when the output dtype is f32: accumulate straight into o_ref.

    x_ref   : (tm, H)      activations (compute dtype, e.g. bf16)
    wgu_ref : (H, 2*ti)    fused [gate | up] weight tile
    wd_ref  : (ti, H)      down-projection weight tile
    o_ref   : (tm, H) f32  output tile, resident across the reduction axis
    """
    @pl.when(pl.program_id(1) == 0)
    def _():
        o_ref[...] = jnp.zeros_like(o_ref)

    # Fused gate|up projection: one MXU matmul, f32 accumulation.
    gu = jnp.dot(x_ref[...], wgu_ref[...], preferred_element_type=jnp.float32)
    g = gu[:, :ti]                       # gate half (f32)
    u = gu[:, ti:]                       # up half   (f32)
    act = (g * jax.lax.logistic(g)) * u  # SiLU(g) * u  (VPU; logistic on EUP)

    # Partial down-projection for this I-tile, accumulated into the f32 output.
    o_ref[...] += jnp.dot(act.astype(wd_ref.dtype), wd_ref[...],
                          preferred_element_type=jnp.float32)


def _mlp_kernel_scratch_acc(x_ref, wgu_ref, wd_ref, o_ref, acc_ref, *, ti):
    """Variant for non-f32 outputs: f32 VMEM accumulator + final cast."""
    @pl.when(pl.program_id(1) == 0)
    def _():
        acc_ref[...] = jnp.zeros_like(acc_ref)

    gu = jnp.dot(x_ref[...], wgu_ref[...], preferred_element_type=jnp.float32)
    g = gu[:, :ti]
    u = gu[:, ti:]
    act = (g * jax.lax.logistic(g)) * u
    acc_ref[...] += jnp.dot(act.astype(wd_ref.dtype), wd_ref[...],
                            preferred_element_type=jnp.float32)

    @pl.when(pl.program_id(1) == pl.num_programs(1) - 1)
    def _():
        o_ref[...] = acc_ref[...].astype(o_ref.dtype)


# ----------------------------------------------------------------------------
# Sizing helpers
# ----------------------------------------------------------------------------

def _round_up(x, m):
    return ((x + m - 1) // m) * m


def _choose_tile(dim, target, granule):
    """Tile <= target, multiple of `granule`.  Prefer an exact divisor of the
    granule-padded dim (no padding); otherwise accept padding `dim` up to a
    multiple of the returned tile."""
    dim_p = _round_up(dim, granule)
    target = max(granule, min(target, dim_p))
    target = (target // granule) * granule
    t = target
    while t >= granule:
        if dim_p % t == 0:
            break
        t -= granule
    if t >= max(granule, target // 2):
        return t
    return target


def _chip_defaults():
    """Per-generation token/intermediate tile targets and VMEM budget."""
    kind = ""
    try:
        kind = jax.devices()[0].device_kind.lower()
    except Exception:  # pragma: no cover - defensive; fall back to safe defaults
        pass
    if "v7" in kind:
        # 64 MiB VMEM / TensorCore: leave headroom; spend VMEM on tm, not ti.
        return dict(token_tile=512, inter_tile=256,
                    vmem_limit_bytes=52 * 1024 * 1024)
    if "v6" in kind:
        # 918 TF/s vs ~1.4 TB/s -> need tm ~650 to be MXU-bound; 128 MiB VMEM.
        return dict(token_tile=768, inter_tile=512,
                    vmem_limit_bytes=100 * 1024 * 1024)
    if "v5 lite" in kind or "v5e" in kind or "v5lite" in kind:
        # 197 TF/s vs ~0.82 TB/s -> tm=256 already compute-bound; big ti cuts
        # accumulator read-modify-write passes (v5e has a single vst slot).
        return dict(token_tile=256, inter_tile=1024,
                    vmem_limit_bytes=100 * 1024 * 1024)
    # Unknown generation: conservative.
    return dict(token_tile=512, inter_tile=512,
                vmem_limit_bytes=64 * 1024 * 1024)


def _vmem_live_bytes(tm, ti, H, w_item, out_item, *, acc_scratch):
    x_b = 2 * tm * H * w_item                 # double-buffered activation tiles
    wgu_b = 2 * H * (2 * ti) * w_item         # double-buffered fused gate|up tiles
    wd_b = 2 * ti * H * w_item                # double-buffered down-proj tiles
    o_b = 2 * tm * H * out_item               # output window
    tmp_b = tm * (2 * ti) * 4 + tm * ti * 4   # gu / act f32 temporaries
    acc_b = tm * H * 4 if acc_scratch else 0  # scratch accumulator (non-f32 out)
    margin = 2 * 1024 * 1024                  # compiler internal scratch
    return x_b + wgu_b + wd_b + o_b + tmp_b + acc_b + margin


# ----------------------------------------------------------------------------
# Weight pre-packing (one-time; hoist out of the forward hot path)
# ----------------------------------------------------------------------------

def pack_llama_mlp_weights(w_gate, w_up, w_down, *, inter_tile=None,
                           compute_dtype=jnp.bfloat16):
    """Transpose to (in, out), cast to the MXU compute dtype, zero-pad the
    intermediate dim to a multiple of the I-tile, and interleave gate|up per
    tile so each (H, 2*ti) block feeds one fused MXU matmul.

    w_gate, w_up : (I, H)  PyTorch nn.Linear layout
    w_down       : (H, I)
    """
    I, H = w_gate.shape
    if inter_tile is None:
        inter_tile = _chip_defaults()["inter_tile"]
    ti = _choose_tile(I, inter_tile, 128)
    I_pad = _round_up(I, ti)
    n_i = I_pad // ti

    wg_t = jnp.zeros((H, I_pad), compute_dtype).at[:, :I].set(
        w_gate.T.astype(compute_dtype))
    wu_t = jnp.zeros((H, I_pad), compute_dtype).at[:, :I].set(
        w_up.T.astype(compute_dtype))
    # Tile i -> [Wg_i | Wu_i] interleaved along the output dim.
    wgu = jnp.concatenate(
        [wg_t.reshape(H, n_i, 1, ti), wu_t.reshape(H, n_i, 1, ti)], axis=2
    ).reshape(H, 2 * I_pad)
    wd_t = jnp.zeros((I_pad, H), compute_dtype).at[:I, :].set(
        w_down.T.astype(compute_dtype))

    return {"wgu": wgu, "wd_t": wd_t, "ti": ti, "inter_size": I,
            "hidden_size": H, "compute_dtype": compute_dtype}


# ----------------------------------------------------------------------------
# Forward
# ----------------------------------------------------------------------------

def llama_mlp_packed(x, packed, *, token_tile=None, vmem_limit_bytes=None):
    """LlamaMLP forward on pre-packed weights.  x: (..., H) -> (..., H)."""
    H = packed["hidden_size"]
    ti = packed["ti"]
    wgu = packed["wgu"]
    wd_t = packed["wd_t"]
    compute_dtype = packed["compute_dtype"]
    I_pad = wd_t.shape[0]
    I_real = packed["inter_size"]
    n_i = I_pad // ti

    defaults = _chip_defaults()
    if token_tile is None:
        token_tile = defaults["token_tile"]
    if vmem_limit_bytes is None:
        vmem_limit_bytes = defaults["vmem_limit_bytes"]

    orig_shape = x.shape
    out_dtype = x.dtype
    M = math.prod(orig_shape[:-1]) if len(orig_shape) > 1 else 1
    x2 = x.reshape(M, H)

    # Token tile: bf16 sublane packing -> multiple of 16; cap so the parallel
    # token axis gets >= 2 grid steps when there is enough work (v7x megacore).
    M16 = _round_up(M, 16)
    tm_target = min(token_tile, M16)
    if M16 >= 32:
        tm_target = min(tm_target, _round_up((M16 + 1) // 2, 16))
    tm = _choose_tile(M, tm_target, 16)

    use_out_acc = (out_dtype == jnp.float32)
    w_item = jnp.dtype(compute_dtype).itemsize
    out_item = jnp.dtype(out_dtype).itemsize
    # Shrink tm until double-buffered DMA windows + f32 temporaries + margin
    # fit inside 90% of the per-generation VMEM budget.
    while tm > 16:
        live = _vmem_live_bytes(tm, ti, H, w_item, out_item,
                                acc_scratch=not use_out_acc)
        if live <= int(0.9 * vmem_limit_bytes):
            break
        tm = max(16, ((tm // 2) // 16) * 16)

    M_pad = _round_up(M, tm)
    n_m = M_pad // tm

    x_c = x2.astype(compute_dtype)
    if M_pad != M:
        x_c = jnp.zeros((M_pad, H), compute_dtype).at[:M, :].set(x_c)

    # Advisory cost estimate; weights are re-streamed once per token tile.
    flops = 2 * M * H * (2 * I_real) + 2 * M * I_real * H
    bytes_accessed = (
        x_c.size * x_c.dtype.itemsize
        + n_m * (wgu.size * wgu.dtype.itemsize + wd_t.size * wd_t.dtype.itemsize)
        + M_pad * H * out_item
    )
    cost = pl.CostEstimate(flops=flops, transcendentals=M * I_real,
                           bytes_accessed=bytes_accessed)

    in_specs = [
        pl.BlockSpec((tm, H), lambda m, i: (m, 0)),        # activations
        pl.BlockSpec((H, 2 * ti), lambda m, i: (0, i)),    # fused gate|up weights
        pl.BlockSpec((ti, H), lambda m, i: (i, 0)),        # down-proj weights
    ]
    out_spec = pl.BlockSpec((tm, H), lambda m, i: (m, 0))  # resident across i

    if use_out_acc:
        kernel = functools.partial(_mlp_kernel_acc_in_out, ti=ti)
        scratch = []
    else:
        kernel = functools.partial(_mlp_kernel_scratch_acc, ti=ti)
        scratch = [pltpu.VMEM((tm, H), jnp.float32)]

    out = pl.pallas_call(
        kernel,
        out_shape=jax.ShapeDtypeStruct((M_pad, H), out_dtype),
        grid_spec=pltpu.PrefetchScalarGridSpec(
            num_scalar_prefetch=0,
            grid=(n_m, n_i),                               # reduction axis last
            in_specs=in_specs,
            out_specs=out_spec,
            scratch_shapes=scratch,
        ),
        compiler_params=pltpu.CompilerParams(
            dimension_semantics=("parallel", "arbitrary"),
            vmem_limit_bytes=int(vmem_limit_bytes),
        ),
        cost_estimate=cost,
    )(x_c, wgu, wd_t)

    if M_pad != M:
        out = out[:M]
    return out.reshape(orig_shape)


def llama_mlp(x, w_gate, w_up, w_down, *, token_tile=None, inter_tile=None,
              compute_dtype=jnp.bfloat16):
    """Convenience wrapper: packs weights then runs the kernel.  For repeated
    forward calls, call pack_llama_mlp_weights() once and reuse the result."""
    packed = pack_llama_mlp_weights(w_gate, w_up, w_down,
                                    inter_tile=inter_tile,
                                    compute_dtype=compute_dtype)
    return llama_mlp_packed(x, packed, token_tile=token_tile)


def _reference(x, w_gate, w_up, w_down):
    """Pure-JAX f32 reference mirroring the PyTorch forward."""
    g = jnp.einsum("...h,ih->...i", x, w_gate, precision="highest")
    u = jnp.einsum("...h,ih->...i", x, w_up, precision="highest")
    return jnp.einsum("...i,hi->...h", jax.nn.silu(g) * u, w_down,
                      precision="highest")


if __name__ == "__main__":
    # Small config consistent with the module: hidden=128, intermediate=256,
    # batch=2, seq=16.  Tile overrides force a 2x2 grid so both the parallel
    # token axis and the accumulate-into-output reduction path are exercised.
    B, S, H, I = 2, 16, 128, 256

    key = jax.random.PRNGKey(0)
    k0, k1, k2, k3 = jax.random.split(key, 4)
    scale = 0.05
    # PyTorch nn.Linear layout: weight is (out_features, in_features), no bias.
    w_gate = scale * jax.random.normal(k0, (I, H), jnp.float32)
    w_up = scale * jax.random.normal(k1, (I, H), jnp.float32)
    w_down = scale * jax.random.normal(k2, (H, I), jnp.float32)
    x = jax.random.normal(k3, (B, S, H), jnp.float32)

    # One-time weight pre-pack (hoisted out of the forward hot path).
    packed = pack_llama_mlp_weights(w_gate, w_up, w_down, inter_tile=128)

    out = llama_mlp_packed(x, packed, token_tile=16)
    out = jax.block_until_ready(out)

    assert out.shape == (B, S, H) and out.dtype == jnp.float32
    assert bool(jnp.isfinite(out).all())

    # Numerical check vs the f32 reference (kernel matmuls run in bf16 with
    # f32 accumulation, so tolerance is loose but tight enough to catch bugs).
    ref = _reference(x, w_gate, w_up, w_down)
    err = float(jnp.max(jnp.abs(out - ref)))
    assert err < 5e-2, f"max abs err {err}"

    print("KERNEL_OK")
</pallas_src>

<mosaic_0001>
module attributes {stable_mosaic.version = 11 : i64} {
  func.func @_mlp_kernel_acc_in_out(%arg0: i32, %arg1: i32, %arg2: memref<16x128xbf16, #tpu.memory_space<vmem>>, %arg3: memref<128x256xbf16, #tpu.memory_space<vmem>>, %arg4: memref<128x128xbf16, #tpu.memory_space<vmem>>, %arg5: memref<16x128xf32, #tpu.memory_space<vmem>>) attributes {dimension_semantics = [#tpu.dimension_semantics<parallel>, #tpu.dimension_semantics<arbitrary>], iteration_bounds = array<i64: 2, 2>, scalar_prefetch = 0 : i64, scratch_operands = 0 : i64, tpu.core_type = #tpu.core_type<tc>, window_params = [{transform_indices = @transform_0, window_bounds = array<i64: 16, 128>}, {transform_indices = @transform_1, window_bounds = array<i64: 128, 256>}, {transform_indices = @transform_2, window_bounds = array<i64: 128, 128>}, {transform_indices = @transform_3, window_bounds = array<i64: 16, 128>}]} {
    %c0_i32 = arith.constant 0 : i32
    %0 = arith.cmpi eq, %arg1, %c0_i32 : i32
    %1 = arith.extui %0 : i1 to i32
    %c0_i32_0 = arith.constant 0 : i32
    %2 = arith.cmpi ne, %1, %c0_i32_0 : i32
    scf.if %2 {
      %cst_12 = arith.constant 0.000000e+00 : f32
      %21 = vector.broadcast %cst_12 : f32 to vector<16x128xf32>
      %c0_13 = arith.constant 0 : index
      %c0_14 = arith.constant 0 : index
      %22 = vector.load %arg5[%c0_13, %c0_14] : memref<16x128xf32, #tpu.memory_space<vmem>>, vector<16x128xf32>
      tpu.vector_store %arg5[%c0_13, %c0_14], %21 {strides = array<i32>} : memref<16x128xf32, #tpu.memory_space<vmem>>, vector<16x128xf32>,
    } else {
    }
    %c0 = arith.constant 0 : index
    %c0_1 = arith.constant 0 : index
    %3 = vector.load %arg2[%c0, %c0_1] : memref<16x128xbf16, #tpu.memory_space<vmem>>, vector<16x128xbf16>
    %c0_2 = arith.constant 0 : index
    %c0_3 = arith.constant 0 : index
    %4 = vector.load %arg3[%c0_2, %c0_3] : memref<128x256xbf16, #tpu.memory_space<vmem>>, vector<128x256xbf16>
    %cst = arith.constant dense<0.000000e+00> : vector<16x256xf32>
    %5 = tpu.matmul %3, %4, %cst {dimension_numbers = #tpu.dot_dimension_numbers<[1], [0], [0], [1], [0, 0, 1, 1], [], []>} : vector<16x128xbf16>, vector<128x256xbf16>, vector<16x256xf32> -> vector<16x256xf32>
    %6 = vector.extract_strided_slice %5 {offsets = [0, 0], sizes = [16, 128], strides = [1, 1]} : vector<16x256xf32> to vector<16x128xf32>
    %7 = vector.extract_strided_slice %5 {offsets = [0, 128], sizes = [16, 128], strides = [1, 1]} : vector<16x256xf32> to vector<16x128xf32>
    %8 = arith.negf %6 : vector<16x128xf32>
    %9 = math.exp %8 : vector<16x128xf32>
    %cst_4 = arith.constant 1.000000e+00 : f32
    %10 = vector.broadcast %cst_4 : f32 to vector<16x128xf32>
    %11 = arith.addf %10, %9 : vector<16x128xf32>
    %12 = arith.divf %10, %11 : vector<16x128xf32>
    %13 = arith.mulf %6, %12 : vector<16x128xf32>
    %14 = arith.mulf %13, %7 : vector<16x128xf32>
    %c0_5 = arith.constant 0 : index
    %c0_6 = arith.constant 0 : index
    %15 = vector.load %arg5[%c0_5, %c0_6] : memref<16x128xf32, #tpu.memory_space<vmem>>, vector<16x128xf32>
    %16 = arith.truncf %14 : vector<16x128xf32> to vector<16x128xbf16>
    %c0_7 = arith.constant 0 : index
    %c0_8 = arith.constant 0 : index
    %17 = vector.load %arg4[%c0_7, %c0_8] : memref<128x128xbf16, #tpu.memory_space<vmem>>, vector<128x128xbf16>
    %cst_9 = arith.constant dense<0.000000e+00> : vector<16x128xf32>
    %18 = tpu.matmul %16, %17, %cst_9 {dimension_numbers = #tpu.dot_dimension_numbers<[1], [0], [0], [1], [0, 0, 1, 1], [], []>} : vector<16x128xbf16>, vector<128x128xbf16>, vector<16x128xf32> -> vector<16x128xf32>
    %19 = arith.addf %15, %18 : vector<16x128xf32>
    %c0_10 = arith.constant 0 : index
    %c0_11 = arith.constant 0 : index
    %20 = vector.load %arg5[%c0_10, %c0_11] : memref<16x128xf32, #tpu.memory_space<vmem>>, vector<16x128xf32>
    tpu.vector_store %arg5[%c0_10, %c0_11], %19 {strides = array<i32>} : memref<16x128xf32, #tpu.memory_space<vmem>>, vector<16x128xf32>,
    return
  }
  func.func @transform_0(%arg0: i32, %arg1: i32) -> (i32, i32) {
    %c0_i32 = arith.constant 0 : i32
    %c0_i32_0 = arith.constant 0 : i32
    return %arg0, %c0_i32 : i32, i32
  }
  func.func @transform_1(%arg0: i32, %arg1: i32) -> (i32, i32) {
    %c0_i32 = arith.constant 0 : i32
    %c0_i32_0 = arith.constant 0 : i32
    return %c0_i32, %arg1 : i32, i32
  }
  func.func @transform_2(%arg0: i32, %arg1: i32) -> (i32, i32) {
    %c0_i32 = arith.constant 0 : i32
    %c0_i32_0 = arith.constant 0 : i32
    return %arg1, %c0_i32 : i32, i32
  }
  func.func @transform_3(%arg0: i32, %arg1: i32) -> (i32, i32) {
    %c0_i32 = arith.constant 0 : i32
    %c0_i32_0 = arith.constant 0 : i32
    return %arg0, %c0_i32 : i32, i32
  }
}

</mosaic_0001>

<bundles_post_ra>
// kernel: tpu_custom_call.1
= control target key start
LH: loop header
LB: loop body
LE: loop exit
PB: predicated region body
PF: predicated region fallthrough
CT: control target
= control target key end

     0   :  { %s1532_s0 = inlined_call_operand.hbm [shape: bf16[32,128], index: 0, kind: input, shape index: {}]   ;;  %s1533_s1 = inlined_call_operand.hbm [shape: bf16[128,512], index: 1, kind: input, shape index: {}]   ;;  %s1534_s2 = inlined_call_operand.hbm [shape: bf16[256,128], index: 2, kind: input, shape index: {}]   ;;  %s1535_s3 = inlined_call_operand.hbm [shape: f32[32,128], index: 3, kind: output, shape index: {}]  }
   0x1   :  { %1546 = sst [smem:[#allocation22_spill]] %s1533_s1 }
   0x2   :  { %1547 = sst [smem:[#allocation23_spill]] %s1535_s3 }
   0x3   :  { %8 = vsyncpa [#allocation3], 0 }
   0x4   :  { %10 = vsyncpa [#allocation3 + $0x1], 0 }
   0x5   :  { %11 = vsyncpa [#allocation6], 0 }
   0x6   :  { %13 = vsyncpa [#allocation6 + $0x1], 0 }
   0x7   :  { %14 = vsyncpa [#allocation4], 0 }
   0x8   :  { %16 = vsyncpa [#allocation4 + $0x1], 0  ;;  %s1225_s12 = smov 0   ;;  %s1227_s13 = smov 0  }
   0x9   :  { %s1229_s14 = smov 0   ;;  %s1231_s15 = smov 0  }
   0xa   :  { %s1233_s16 = smov 0   ;;  %s1235_s17 = smov 0  }
   0xb   :  { %s1237_s18 = smov 0   ;;  %s1239_s19 = smov 0  }
   0xc   :  { %s1241_s20 = smov 0   ;;  %s1243_s21 = smov 0  }
   0xd   :  { %s1245_s22 = smov 0  }
   0xe LB: > { %1548 = sst [smem:[#allocation12_spill]] %s1167_s15  ;;  %s31_s23 = sadd.s32 1, %s1187_s20  ;;  %s1195_s22 = sphi %s1245_s22, %s22_s22   ;;  %s1191_s21 = sphi %s1243_s21, %s1579_s21   ;;  %s1187_s20 = sphi %s1241_s20, %s1586_s20   ;;  %s1183_s19 = sphi %s1239_s19, %s1577_s19   ;;  %s1179_s18 = sphi %s1237_s18, %s1585_s18   ;;  %s1175_s17 = sphi %s1235_s17, %s1576_s17   ;;  %s1171_s16 = sphi %s1233_s16, %s1584_s16   ;;  %s1167_s15 = sphi %s1231_s15, %s1583_s15   ;;  %s1163_s14 = sphi %s1229_s14, %s1582_s14   ;;  %s1159_s13 = sphi %s1227_s13, %s1581_s13   ;;  %s1155_s12 = sphi %s1225_s12, %s1580_s12  }
   0xf   : > { %1549 = sst [smem:[#allocation13_spill]] %s1175_s17  ;;  %p49_p0 = scmp.eq.s32.totalorder %s1195_s22, 0 }
  0x10   : > { %1550 = sst [smem:[#allocation14_spill]] %s1183_s19  ;;  %p1282_p1 = scmp.ge.s32.totalorder %s31_s23, 2 }
  0x11   : > { %1551 = sst [smem:[#allocation15_spill]] %s1191_s21  ;;  %s67_s25 = sadd.s32 1, %s1163_s14 }
  0x12   : > { %p74_p2 = scmp.ne.s32.totalorder %s1163_s14, %s1159_s13  ;;  %p80_p3 = scmp.ne.s32.totalorder %s1159_s13, %s1155_s12 }
  0x13   : > { %s1588_s23 = smov (%p1282_p1, %s31_s23), 0  ;;  %p873_p5 = scmp.lt.s32.totalorder %s1195_s22, 4 }
  0x14   : > { %1553 = sst [smem:[#allocation16_spill]] %s1588_s23  ;;  %p1297_p4 = por %p74_p2, %p49_p0 }
  0x15   : > { %s64_s27 = ssub.s32 %s1187_s20, %s1588_s23  ;;  %s178_s28 = sand.u32 1, %s1195_s22  }
  0x16   : > { %p65_p6 = scmp.eq.s32.totalorder %s64_s27, 0  ;;  %s1536_s29 = sand.u32 1, %s1163_s14  }
  0x17   : > { %s703_s4 = sshll.u32 %s1536_s29, 7  ;;  %s823_s5 = sshll.u32 %s1187_s20, 3 }
  0x18   : > { %s1307_s30 = scalar_select %p65_p6, %s1163_s14, %s67_s25  }
  0x19   : > { %s1556_s1 = sld [smem:[#allocation22_spill]]  ;;  %s182_s10 = scalar_lea.vmem [#allocation5], %s703_s4 }
  0x1a   : > { %1555 = sst [smem:[#allocation17_spill]] %s1307_s30  ;;  %s190_s11 = sshll.u32 %s182_s10, 4  ;;  %s191_s11 = int_to_ptr.vmem [resolvable:$true] %s190_s11 }
  0x1b   : > { %p1319_p7 = pnand %p873_p5, %p1297_p4  ;;  %p709_p8 = scmp.ge.s32.totalorder %s1195_s22, 1 }
  0x1c   : > { %s1324_s27 = scalar_lea.sflag [#allocation6], %s178_s28  ;;  %s1197_s4 = smov 256  }
  0x1d   : > { %s1199_s6 = smov 8   ;;  %p220_p9 = scmp.lt.s32.totalorder %s1195_s22, 5 }
  0x1e   : > { %s1335_s7 = sadd.s32 4294967295, %s1195_s22   ;;  %s697_s28 = sadd.s32 4294967294, %s1195_s22  }
  0x1f   : > { %s187_s8 = scalar_lea.hbm %s1556_s1, %s823_s5  ;;  %s1198_s5 = smov 128  }
  0x20   : > { %s188_s9 = sshll.u32 %s187_s8, 4  ;;  %p1330_p10 = pnand %p709_p8, %p220_p9  ;;  %s189_s9 = int_to_ptr.hbm [resolvable:$true] %s188_s9 }
  0x21   : > { %865 = dma.hbm_to_vmem [thread:$0]  (!%p1319_p7), %s189_s9, 2048, %s191_s11, %s1324_s27, %s1197_s4, %s1198_s5, %s1199_s6  }
  0x22   : > { %s34_s8 = sadd.s32 1, %s1191_s21  ;;  %s41_s10 = sadd.s32 1, %s1175_s17 }
  0x23   : > { %s1590_s8 = smov (!%p1282_p1, %s34_s8), %s1191_s21  ;;  %p48_p11 = scmp.ne.s32.totalorder %s1175_s17, %s1171_s16 }
  0x24   : > { %p54_p12 = scmp.ne.s32.totalorder %s1171_s16, %s1167_s15  ;;  %p36_p13 = scmp.ge.s32.totalorder %s1590_s8, 2 }
  0x25   : > { %p55_p2 = scmp.eq.s32.totalorder %s1335_s7, 0  ;;  %p1350_p4 = por %p49_p0, %p48_p11 }
  0x26   : > { %p130_p6 = scmp.eq.s32.totalorder %s1335_s7, 3  ;;  %s1592_s8 = smov (%p36_p13, %s1590_s8), 0 }
  0x27   : > { %1560 = sst [smem:[#allocation18_spill]] %s1592_s8  ;;  %p1360_p8 = por %p55_p2, %p54_p12 }
  0x28   : > { %p1367_p1 = por %p80_p3, %p55_p2  ;;  %s38_s4 = ssub.s32 %s1191_s21, %s1592_s8 }
  0x29   : > { %p1373_p0 = por %p130_p6, %p48_p11  ;;  %p39_p9 = scmp.eq.s32.totalorder %s38_s4, 0 }
  0x2a   : > { %p136_p13 = scmp.eq.s32.totalorder %s697_s28, 3  ;;  %s156_s6 = sand.u32 1, %s1175_s17  }
  0x2b   : > { %s1563_s5 = scalar_select %p1373_p0, 1, 0 }
  0x2c   : > { %s822_s29 = sshll.u32 %s1191_s21, 3  ;;  %p1385_p3 = por %p136_p13, %p54_p12 }
  0x2d   : > { %1564 = sst [smem:[#allocation19_spill]] %s1563_s5  ;;  %s700_s23 = sshll.u32 %s156_s6, 3 }
  0x2e   : > { %s1380_s1 = scalar_select %p39_p9, %s1175_s17, %s41_s10  }
  0x2f   : > { %s1566_s12 = scalar_select %p1385_p3, 1, 0 }
  0x30   : > { %1565 = sst [smem:[#allocation20_spill]] %s1380_s1  ;;  %s165_s3 = scalar_lea.hbm %s1532_s0, %s822_s29 }
  0x31   : > { %1567 = sst [smem:[#allocation21_spill]] %s1566_s12  ;;  %s166_s19 = sshll.u32 %s165_s3, 4  ;;  %s167_s19 = int_to_ptr.hbm [resolvable:$true] %s166_s19 }
  0x32   : > { %s160_s5 = scalar_lea.vmem [#allocation2], %s700_s23  ;;  %p860_p11 = pnand %p873_p5, %p1350_p4 }
  0x33   : > { %s168_s28 = sshll.u32 %s160_s5, 4  ;;  %s1568_s10 = sand.u32 1, %s1163_s14   ;;  %s169_s28 = int_to_ptr.vmem [resolvable:$true] %s168_s28 }
  0x34   : > { %s706_s4 = sshll.u32 %s1568_s10, 6  ;;  %s157_s21 = scalar_lea.sflag [#allocation3], %s156_s6 }
  0x35   : > { %s1200_s1 = smov 64   ;;  %s1201_s17 = smov 4  }
  0x36   : > { %862 = dma.hbm_to_vmem [thread:$0]  (!%p860_p11), %s167_s19, 128, %s169_s28, %s157_s21, %s1200_s1, %s1200_s1, %s1201_s17  }
  0x37   : > { %s824_s12 = sshll.u32 %s1187_s20, 6  ;;  %s204_s29 = scalar_lea.vmem [#allocation7], %s706_s4 }
  0x38   : > { %s209_s3 = scalar_lea.hbm %s1534_s2, %s824_s12  ;;  %s212_s23 = sshll.u32 %s204_s29, 4  ;;  %s213_s23 = int_to_ptr.vmem [resolvable:$true] %s212_s23 }
  0x39   : > { %s210_s8 = sshll.u32 %s209_s3, 4  ;;  %224 = sbr.rel (%p1330_p10) target bundleno = 427 (0x1ab), region = 32  ;;  %s211_s8 = int_to_ptr.hbm [resolvable:$true] %s210_s8 }
  0x3a   : > { %868 = dma.hbm_to_vmem [thread:$0]  (!%p1319_p7), %s211_s8, 1024, %s213_s23, %s1324_s27, %s1200_s1, %s1200_s1, %s1201_s17  }
  0x3b   : > { %s1408_s9 = sand.u32 (!%p1330_p10), 1, %s1171_s16  }
  0x3c   : > { %s710_s19 = sshll.u32 (!%p1330_p10), %s1408_s9, 3  ;;  %s227_s21 = scalar_lea.sflag (!%p1330_p10), [#allocation3], %s1408_s9 }
  0x3d   : > { %s1412_s15 = scalar_lea.vmem (!%p1330_p10), [#allocation2], %s710_s19 }
  0x3e   : > { %1142 = dma.done.wait (%p1360_p8), %s227_s21, 128  }
  0x3f   : > { %1144 = vsyncadd (%p1360_p8), %s227_s21, 4294967168  ;;  %s236_s1 = sand.u32 1, %s1335_s7   ;;  %s238_s17 = sand.u32 1, %s1159_s13  }
  0x40   : > { %s711_s25 = sshll.u32 %s238_s17, 7  ;;  %s237_s27 = scalar_lea.sflag [#allocation6], %s236_s1 }
  0x41   : > { %s1420_s26 = scalar_lea.vmem [#allocation5], %s711_s25 }
  0x42   : > { %1146 = dma.done.wait (%p1367_p1), %s237_s27, 3072  }
  0x43   : > { %1148 = vsyncadd (%p1367_p1), %s237_s27, 4294964224  ;;  %s712_s5 = sshll.u32 %s238_s17, 6  ;;  %s713_s6 = sshll.u32 %s1408_s9, 4 }
  0x44   : > { %s1427_s12 = scalar_lea.vmem [#allocation7], %s712_s5  ;;  %s1429_s24 = scalar_lea.vmem [#allocation8], %s713_s6 }
  0x45   : > { %p714_p5 = scmp.ne.s32.totalorder %s1179_s18, 0 }
  0x47   : > { %291 = sbr.rel (%p714_p5) target bundleno = 79 (0x4f), region = 48 }
  0x4c   : > { %v1202_v0 = vmov 0.0  }
  0x4d   : > { %292 = vst [vmem:[%s1429_s24] sm:$0xff] %v1202_v0 }
  0x4e   : > { %293 = vst [vmem:[%s1429_s24 + $0x8] sm:$0xff] %v1202_v0 }
  0x4f PF: > { %v777_v1 = vld [vmem:[%s1420_s26 + $0x70] sm:$0xf]  ;;  %v841_v2 = vld [vmem:[%s1420_s26 + $0x74] sm:$0xf0]  ;;  %v769_v3 = vld [vmem:[%s1420_s26 + $0x60] sm:$0xf] }
  0x50   : > { %v778_v4 = vor.u32 %v841_v2, %v777_v1  ;;  %v839_v5 = vld [vmem:[%s1420_s26 + $0x64] sm:$0xf0]  ;;  %v761_v7 = vld [vmem:[%s1420_s26 + $0x50] sm:$0xf]  ;;  %v837_v8 = vld [vmem:[%s1420_s26 + $0x54] sm:$0xf0] }
  0x51   : > { %v770_v6 = vor.u32 %v839_v5, %v769_v3  ;;  %v840_v9 = vld [vmem:[%s1420_s26 + $0x74] sm:$0xf]  ;;  %v779_v10 = vld [vmem:[%s1420_s26 + $0x78] sm:$0xf0]  ;;  %v838_v12 = vld [vmem:[%s1420_s26 + $0x64] sm:$0xf]  ;;  %v762_v14 = vor.u32 %v837_v8, %v761_v7 }
  0x52   : > { %398 = vmatpush.bf16.msra.mxu0 %v778_v4  ;;  %v782_v11 = vor.u32 %v840_v9, %v779_v10  ;;  %v771_v13 = vld [vmem:[%s1420_s26 + $0x68] sm:$0xf0]  ;;  %v753_v15 = vld [vmem:[%s1420_s26 + $0x40] sm:$0xf]  ;;  %v835_v17 = vld [vmem:[%s1420_s26 + $0x44] sm:$0xf0] }
  0x53   : > { %v774_v16 = vor.u32 %v838_v12, %v771_v13  ;;  %v836_v18 = vld [vmem:[%s1420_s26 + $0x54] sm:$0xf]  ;;  %v763_v19 = vld [vmem:[%s1420_s26 + $0x58] sm:$0xf0]  ;;  %v754_v20 = vor.u32 %v835_v17, %v753_v15  ;;  %v745_v21 = vld [vmem:[%s1420_s26 + $0x30] sm:$0xf] }
  0x54   : > { %412 = vmatpush.bf16.msra.mxu1 %v782_v11  ;;  %v766_v22 = vor.u32 %v836_v18, %v763_v19  ;;  %v833_v23 = vld [vmem:[%s1420_s26 + $0x34] sm:$0xf0]  ;;  %v834_v24 = vld [vmem:[%s1420_s26 + $0x44] sm:$0xf]  ;;  %v755_v25 = vld [vmem:[%s1420_s26 + $0x48] sm:$0xf0] }
  0x55   : > { %v746_v26 = vor.u32 %v833_v23, %v745_v21  ;;  %v737_v27 = vld [vmem:[%s1420_s26 + $0x20] sm:$0xf]  ;;  %v758_v28 = vor.u32 %v834_v24, %v755_v25  ;;  %v831_v29 = vld [vmem:[%s1420_s26 + $0x24] sm:$0xf0]  ;;  %v832_v30 = vld [vmem:[%s1420_s26 + $0x34] sm:$0xf] }
  0x56   : > { %399 = vmatpush.bf16.msra.mxu0 %v770_v6  ;;  %v747_v31 = vld [vmem:[%s1420_s26 + $0x38] sm:$0xf0]  ;;  %v738_v32 = vor.u32 %v831_v29, %v737_v27  ;;  %v729_v33 = vld [vmem:[%s1420_s26 + $0x10] sm:$0xf]  ;;  %v829_v35 = vld [vmem:[%s1420_s26 + $0x14] sm:$0xf0] }
  0x57   : > { %v750_v34 = vor.u32 %v832_v30, %v747_v31  ;;  %v830_v36 = vld [vmem:[%s1420_s26 + $0x24] sm:$0xf]  ;;  %v739_v37 = vld [vmem:[%s1420_s26 + $0x28] sm:$0xf0]  ;;  %v730_v38 = vor.u32 %v829_v35, %v729_v33  ;;  %v721_v39 = vld [vmem:[%s1420_s26] sm:$0xf] }
  0x58   : > { %413 = vmatpush.bf16.msra.mxu1 %v774_v16  ;;  %v742_v40 = vor.u32 %v830_v36, %v739_v37  ;;  %v827_v41 = vld [vmem:[%s1420_s26 + $0x4] sm:$0xf0]  ;;  %v828_v42 = vld [vmem:[%s1420_s26 + $0x14] sm:$0xf]  ;;  %v731_v43 = vld [vmem:[%s1420_s26 + $0x18] sm:$0xf0] }
  0x59   : > { %v722_v44 = vor.u32 %v827_v41, %v721_v39  ;;  %v734_v45 = vor.u32 %v828_v42, %v731_v43  ;;  %v826_v46 = vld [vmem:[%s1420_s26 + $0x4] sm:$0xf]  ;;  %v723_v47 = vld [vmem:[%s1420_s26 + $0x8] sm:$0xf0]  ;;  %v825_v48 = vld [vmem:[%s1412_s15] sm:$0xff]  ;;  %s1569_s18 = sld [smem:[#allocation14_spill]] }
  0x5a   : > { %400 = vmatpush.bf16.msra.mxu0 %v762_v14  ;;  %v726_v49 = vor.u32 %v826_v46, %v723_v47  ;;  %v849_v50 = vld [vmem:[%s1427_s12 + $0x38] sm:$0xff]  ;;  %v848_v51 = vld [vmem:[%s1427_s12 + $0x30] sm:$0xff]  ;;  %v847_v52 = vld [vmem:[%s1427_s12 + $0x28] sm:$0xff]  ;;  %s1570_s10 = sld [smem:[#allocation23_spill]]  ;;  %s566_s3 = sshll.u32 %s1429_s24, 4  ;;  %s567_s3 = int_to_ptr.vmem [resolvable:$true] %s566_s3 }
  0x5b   : > { %535 = vmatpush.bf16.msra.mxu2 %v849_v50  ;;  %v846_v53 = vld [vmem:[%s1427_s12 + $0x20] sm:$0xff]  ;;  %v845_v54 = vld [vmem:[%s1427_s12 + $0x18] sm:$0xff]  ;;  %v844_v55 = vld [vmem:[%s1427_s12 + $0x10] sm:$0xff]  ;;  %s554_s23 = scalar_lea.sflag [#allocation4], %s1408_s9 }
  0x5c   : > { %414 = vmatpush.bf16.msra.mxu1 %v766_v22  ;;  %v843_v58 = vld [vmem:[%s1427_s12 + $0x8] sm:$0xff]  ;;  %v842_v59 = vld [vmem:[%s1427_s12] sm:$0xff] }
  0x5d   : > { %v468_v29 = vld [vmem:[%s1429_s24] sm:$0xff] }
  0x5e   : > { %401 = vmatpush.bf16.msra.mxu0 %v754_v20 }
  0x5f   : > { %536 = vmatpush.bf16.msra.mxu2 %v848_v51  ;;  %s850_s7 = sshll.u32 %s1569_s18, 4 }
  0x60   : > { %415 = vmatpush.bf16.msra.mxu1 %v758_v28  ;;  %s565_s30 = scalar_lea.hbm %s1570_s10, %s850_s7  ;;  %s1089_s1 = scalar_lea.hbm %s1570_s10, 32 }
  0x61   : > { %s568_s29 = sshll.u32 %s565_s30, 4  ;;  %s569_s29 = int_to_ptr.hbm [resolvable:$true] %s568_s29 }
  0x62   : > { %402 = vmatpush.bf16.msra.mxu0 %v746_v26  ;;  %s1083_s8 = sshra.s32 %s569_s29, 4  ;;  %s1084_s8 = int_to_ptr.hbm [resolvable:$true] %s1083_s8 }
  0x63   : > { %537 = vmatpush.bf16.msra.mxu2 %v847_v52  ;;  %s1085_s19 = scalar_lea.hbm %s1084_s8, 16  ;;  %p1090_p2 = scmp.lt.s32.totalorder %s1084_s8, %s1570_s10 }
  0x64   : > { %416 = vmatpush.bf16.msra.mxu1 %v750_v34  ;;  %p1086_p7 = scmp.ne.s32.totalorder %s1084_s8, %s1085_s19  ;;  %p1091_p4 = scmp.lt.s32.totalorder %s1089_s1, %s1085_s19 }
  0x66   : > { %403 = vmatpush.bf16.msra.mxu0 %v738_v32  ;;  %v469_v32 = vld [vmem:[%s1429_s24 + $0x8] sm:$0xff]  ;;  %p1087_p10 = pnand %p1086_p7, %p1373_p0  ;;  %p1092_p6 = por %p1091_p4, %p1090_p2 }
  0x67   : > { %538 = vmatpush.bf16.msra.mxu2 %v846_v53 }
  0x68   : > { %417 = vmatpush.bf16.msra.mxu1 %v742_v40  ;;  %p1088_p12 = pneg %p1087_p10 }
  0x6a   : > { %404 = vmatpush.bf16.msra.mxu0 %v730_v38  ;;  %p1093_p8 = pnand %p1092_p6, %p1088_p12 }
  0x6b   : > { %539 = vmatpush.bf16.msra.mxu2 %v845_v54 }
  0x6c   : > { %418 = vmatpush.bf16.msra.mxu1 %v734_v45 }
  0x6e   : > { %405 = vmatpush.bf16.msra.mxu0 %v722_v44 }
  0x6f   : > { %540 = vmatpush.bf16.msra.mxu2 %v844_v55 }
  0x70   : > { %419 = vmatpush.bf16.msra.mxu1 %v726_v49 }
  0x71   : > { %406 = vmatmul.bf16.vlgmr.msra.gmra.mxu0 %v825_v48 }
  0x73   : > { %420 = vmatmul.bf16.vlgmr.msra.gmra.mxu1 %v825_v48  ;;  %541 = vmatpush.bf16.msra.mxu2 %v843_v58 }
  0x77   : > { %542 = vmatpush.bf16.msra.mxu2 %v842_v59 }
  0xee   : > { %v407_v56 = vpop.f32.mrf.mxu0 }
  0xef   : > { %v783_v57 = vmul.f32 -1.442695, %v407_v56 }
  0xf0   : > { %v421_v11 = vpop.f32.mrf.mxu1 }
  0xf1   : > { %971 = vpow2.f32 %v783_v57 }
  0xf6   : > { %v409_v60 = vpop.f32.mrf.mxu0 }
  0xf7   : > { %v972_v61 = vpop.eup %971  ;;  %v784_v62 = vmul.f32 -1.442695, %v409_v60 }
  0xf8   : > { %v432_v63 = vadd.f32 1.0, %v972_v61  ;;  %v423_v25 = vpop.f32.mrf.mxu1 }
  0xf9   : > { %973 = vpow2.f32 %v784_v62 }
  0xfa   : > { %975 = vrcp.f32 %v432_v63  ;;  %v445_v8 = vand.u32 2147483648, %v432_v63  ;;  %vm439_vm1 = vweird.f32 %v432_v63  ;;  %v443_v9 = vand.u32 2147483647, %v432_v63 }
  0xfc   : > { %v446_v14 = vor.u32 1.1754944e-38, %v445_v8  ;;  %vm444_vm3 = vcmp.eq.f32.partialorder %v443_v9, 8.507059e+37 }
  0xff   : > { %v974_v0 = vpop.eup %973 }
 0x100   : > { %v976_v1 = vpop.eup %975  ;;  %v433_v2 = vadd.f32 1.0, %v974_v0 }
 0x101   : > { %v435_v3 = vmul.f32 %v976_v1, %v432_v63  ;;  %vm440_vm0 = vweird.f32 %v976_v1 }
 0x102   : > { %977 = vrcp.f32 %v433_v2  ;;  %vm441_vm2 = vmor %vm439_vm1, %vm440_vm0  ;;  %v460_v15 = vand.u32 2147483648, %v433_v2  ;;  %v458_v17 = vand.u32 2147483647, %v433_v2  ;;  %vm454_vm5 = vweird.f32 %v433_v2 }
 0x103   : > { %v436_v4 = vsub.f32 1.0, %v435_v3 }
 0x104   : > { %v461_v20 = vor.u32 1.1754944e-38, %v460_v15  ;;  %vm459_vm7 = vcmp.eq.f32.partialorder %v458_v17, 8.507059e+37 }
 0x105   : > { %v437_v5 = vmul.f32 %v976_v1, %v436_v4 }
 0x107   : > { %v438_v6 = vadd.f32 %v976_v1, %v437_v5 }
 0x108   : > { %v978_v7 = vpop.eup %977 }
 0x109   : > { %v450_v10 = vmul.f32 %v978_v7, %v433_v2  ;;  %v442_v12 = vsel %vm441_vm2, %v976_v1, %v438_v6  ;;  %vm455_vm4 = vweird.f32 %v978_v7 }
 0x10a   : > { %v447_v18 = vsel %vm444_vm3, %v446_v14, %v442_v12  ;;  %vm456_vm6 = vmor %vm454_vm5, %vm455_vm4 }
 0x10b   : > { %v451_v13 = vsub.f32 1.0, %v450_v10  ;;  %v464_v21 = vmul.f32 %v447_v18, %v407_v56 }
 0x10d   : > { %v452_v16 = vmul.f32 %v978_v7, %v451_v13  ;;  %v466_v26 = vmul.f32 %v464_v21, %v421_v11 }
 0x10f   : > { %v453_v19 = vadd.f32 %v978_v7, %v452_v16 }
 0x111   : > { %v457_v22 = vsel %vm456_vm6, %v978_v7, %v453_v19 }
 0x112   : > { %v462_v23 = vsel %vm459_vm7, %v461_v20, %v457_v22 }
 0x113   : > { %v465_v24 = vmul.f32 %v462_v23, %v409_v60 }
 0x115   : > { %v467_v27 = vmul.f32 %v465_v24, %v423_v25 }
 0x117   : > { %v470_v28 = vpack.c.bf16 %v467_v27, %v466_v26 }
 0x119   : > { %543 = vmatmul.bf16.vlgmr.msra.gmra.mxu2 %v470_v28 }
 0x19c   : > { %v544_v30 = vpop.f32.mrf.mxu2 }
 0x19d   : > { %v549_v31 = vadd.f32 %v544_v30, %v468_v29 }
 0x19f   : > { %551 = vst [vmem:[%s1429_s24] sm:$0xff] %v549_v31 }
 0x1a4   : > { %v546_v33 = vpop.f32.mrf.mxu2 }
 0x1a5   : > { %v550_v34 = vadd.f32 %v546_v33, %v469_v32 }
 0x1a7   : > { %552 = vst [vmem:[%s1429_s24 + $0x8] sm:$0xff] %v550_v34 }
 0x1a8   : > { %1096 = shalt.err (!%p1093_p8)
}
 0x1a9   : > { %s1203_s9 = smov 128   ;;  %s1204_s27 = smov 8  }
 0x1aa   : > { %857 = dma.vmem_to_hbm [thread:$0]  (%p1373_p0), %s567_s3, 256, %s569_s29, %s554_s23, %s1203_s9, %s1203_s9, %s1204_s27  }
 0x1ab PF: > { %s1572_s26 = sld [smem:[#allocation12_spill]]  ;;  %p874_p1 = scmp.ge.s32.totalorder %s1195_s22, 2 }
 0x1ad   : > { %p870_p9 = pnand %p874_p1, %p1385_p3 }
 0x1af   : > { %p871_p13 = pneg %p870_p9 }
 0x1b1   : > { %s583_s6 = sand.u32 1, %s1572_s26  }
 0x1b2   : > { %s584_s12 = scalar_lea.sflag [#allocation4], %s583_s6 }
 0x1b3   : > { %1150 = dma.done.wait (%p871_p13), %s584_s12, 256  }
 0x1b4   : > { %1152 = vsyncadd (%p871_p13), %s584_s12, 4294967040  ;;  %s22_s22 = sadd.s32 1, %s1195_s22   ;;  %s1574_s24 = sld [smem:[#allocation17_spill]] }
 0x1b5   : > { %p19_p11 = scmp.ge.s32.totalorder %s22_s22, 6   ;;  %s1575_s18 = sld [smem:[#allocation13_spill]] }
 0x1b6   : > { %s1576_s17 = sld [smem:[#allocation20_spill]]  ;;  %s1580_s12 = smov %s1159_s13 }
 0x1b7   : > { %s1577_s19 = sld [smem:[#allocation15_spill]]  ;;  %s1581_s13 = smov %s1163_s14 }
 0x1b8   : > { %s1578_s7 = sld [smem:[#allocation16_spill]]  ;;  %s1583_s15 = smov %s1171_s16 }
 0x1b9   : > { %s1579_s21 = sld [smem:[#allocation18_spill]] }
 0x1ba   : > { %s1582_s14 = smov %s1574_s24  ;;  %21 = sbr.rel (!%p19_p11) target bundleno = 14 (0xe), region = 105 }
 0x1bb   : > { %s1584_s16 = smov %s1575_s18  ;;  %s1585_s18 = smov %s1187_s20 }
 0x1be   : > { %s1586_s20 = smov %s1578_s7 }
 0x1bf   :  { %590 = vsyncpa [#allocation3], 1 }
 0x1c0   :  { %592 = vsyncpa [#allocation3 + $0x1], 1 }
 0x1c1   :  { %593 = vsyncpa [#allocation6], 1 }
 0x1c2   :  { %595 = vsyncpa [#allocation6 + $0x1], 1 }
 0x1c3   :  { %596 = vsyncpa [#allocation4], 1 }
 0x1c4   :  { %598 = vsyncpa [#allocation4 + $0x1], 1 }

</bundles_post_ra>
